<compile_context>
chip_gen: v7x
topology: tpu7x:2x2x1
jax: 0.10.0
libtpu: 0.0.40
codegen_flags: <defaults>
</compile_context>

<pallas_src>
import jax
import jax.numpy as jnp
import numpy as np
from jax.experimental import pallas as pl
from jax.experimental.pallas import tpu as pltpu


_VMEM = pl.BlockSpec(memory_space=pltpu.MemorySpace.VMEM)


# ----------------------------------------------------------------------------
# Host-side packing helper
# ----------------------------------------------------------------------------

def _round8(n):
    return -(-n // 8) * 8


def _pack_rows(arrays, width):
    """Stack 2-D arrays along the sublane axis into one [R, width] f32 blob.

    Each array's row-block is padded to a multiple of 8 rows so every in-kernel
    static ref slice stays sublane-aligned (no relayout copies). Narrow arrays
    are zero-padded along lanes to `width`.
    Returns (blob, per-array row offsets).
    """
    blocks, offsets, off = [], [], 0
    for a in arrays:
        r, c = a.shape
        rp = _round8(r)
        blk = jnp.zeros((rp, width), jnp.float32).at[:r, :c].set(
            a.astype(jnp.float32))
        blocks.append(blk)
        offsets.append(off)
        off += rp
    return jnp.concatenate(blocks, axis=0), offsets


# ----------------------------------------------------------------------------
# Fused Pallas kernel
# ----------------------------------------------------------------------------

def _make_fused_kernel(n_src, n_dst, dims, a_offs, oh_off, n_edges, p_offs):
    """Build the fully fused SAGE-forward kernel.

    Ref layout:
      x_ref : [n_src[0], dims[0]]                       node features
      g_ref : graph blob  -- per layer A_norm_l [n_dst_l, n_src_l] at a_offs[l],
              plus the one-hot gather matrix [2*n_edges, n_final] at oh_off
      p_ref : parameter blob -- per layer (W_self, W_neigh, bias) at
              p_offs[3l:3l+3], then predictor (w1,b1,w2,b2,w3,b3)
      o_ref : [n_edges, 1] scores (pos first, then neg)
    """
    n_layers = len(n_dst)
    n_final = n_dst[-1]
    hid = dims[-1]

    def kernel(x_ref, g_ref, p_ref, o_ref):
        f32 = jnp.float32

        # ----------------- GraphSAGE layers (all VMEM-resident) --------------
        h = x_ref[...]
        h_dst = x_ref[:n_dst[0], :]                       # sublane prefix slice
        for l in range(n_layers):
            d_in, d_out = dims[l], dims[l + 1]
            a = g_ref[a_offs[l]:a_offs[l] + n_dst[l], :n_src[l]]
            ws_off, wn_off, b_off = p_offs[3 * l], p_offs[3 * l + 1], p_offs[3 * l + 2]
            w_self = p_ref[ws_off:ws_off + d_in, :d_out]
            w_neigh = p_ref[wn_off:wn_off + d_in, :d_out]
            bias = p_ref[b_off:b_off + 1, :d_out]

            agg = jnp.dot(a, h, preferred_element_type=f32)        # mean agg
            # two dots + add (no lane-axis concat -> no relayout copy)
            h = (jnp.dot(h_dst, w_self, preferred_element_type=f32)
                 + jnp.dot(agg, w_neigh, preferred_element_type=f32)
                 + bias)
            if l != n_layers - 1:
                h = jnp.maximum(h, 0.0)
                h_dst = h[:n_dst[l + 1], :]

        # ----------------- edge-endpoint gather (one-hot matmul) -------------
        onehot = g_ref[oh_off:oh_off + 2 * n_edges, :n_final]       # [2E, Nf]
        gathered = jnp.dot(onehot, h, preferred_element_type=f32)   # [2E, hid]
        z = gathered[:n_edges, :] * gathered[n_edges:, :]           # h[src]*h[dst]

        # ----------------- edge-score MLP (pos + neg in one batch) -----------
        w1o, b1o, w2o, b2o, w3o, b3o = p_offs[3 * n_layers:3 * n_layers + 6]
        w1 = p_ref[w1o:w1o + hid, :hid]
        b1 = p_ref[b1o:b1o + 1, :hid]
        w2 = p_ref[w2o:w2o + hid, :hid]
        b2 = p_ref[b2o:b2o + 1, :hid]
        w3 = p_ref[w3o:w3o + hid, :1]
        b3 = p_ref[b3o:b3o + 1, :1]

        z = jnp.maximum(jnp.dot(z, w1, preferred_element_type=f32) + b1, 0.0)
        z = jnp.maximum(jnp.dot(z, w2, preferred_element_type=f32) + b2, 0.0)
        o_ref[...] = jnp.dot(z, w3, preferred_element_type=f32) + b3

    return kernel


# ----------------------------------------------------------------------------
# Wrapper
# ----------------------------------------------------------------------------

def sage_forward(pos_edges, neg_edges, blocks, x, layer_params, pred_params):
    """Mirrors SAGE.forward(pair_graph, neg_pair_graph, blocks, x) -- one fused kernel."""
    n_src = tuple(int(a.shape[1]) for a in blocks)
    n_dst = tuple(int(a.shape[0]) for a in blocks)
    dims = tuple([int(layer_params[0][0].shape[0])]
                 + [int(p[0].shape[1]) for p in layer_params])
    n_pos = int(pos_edges[0].shape[0])
    n_neg = int(neg_edges[0].shape[0])
    n_edges = n_pos + n_neg
    n_final = n_dst[-1]

    # edge endpoints [pos_src; neg_src; pos_dst; neg_dst] -> one-hot gather matrix
    edge_idx = jnp.concatenate(
        [pos_edges[0], neg_edges[0], pos_edges[1], neg_edges[1]]).astype(jnp.int32)
    onehot = jax.nn.one_hot(edge_idx, n_final, dtype=jnp.float32)   # [2E, n_final]

    # per-batch graph blob: A_norm blocks + one-hot gather matrix  (1 DMA)
    g_width = max(max(n_src), n_final)
    graph_blob, g_offs = _pack_rows(list(blocks) + [onehot], g_width)
    a_offs, oh_off = tuple(g_offs[:len(blocks)]), g_offs[len(blocks)]

    # model-parameter blob: (W_self, W_neigh, bias) per layer + predictor  (1 DMA)
    p_arrays = []
    for (w_self, w_neigh, bias) in layer_params:
        p_arrays += [w_self, w_neigh, bias]
    p_arrays += list(pred_params)
    p_width = max(int(a.shape[1]) for a in p_arrays)
    param_blob, p_offs = _pack_rows(p_arrays, p_width)
    p_offs = tuple(p_offs)

    # TODO(synk): for v6e/v7x at scale, cast x / graph_blob / param_blob to bf16
    # here (keep f32 accumulation in-kernel) to halve DMA bytes and vreg footprint.

    kernel = _make_fused_kernel(n_src, n_dst, dims, a_offs, oh_off, n_edges, p_offs)

    scores = pl.pallas_call(
        kernel,
        out_shape=jax.ShapeDtypeStruct((n_edges, 1), jnp.float32),
        in_specs=[_VMEM, _VMEM, _VMEM],
        out_specs=_VMEM,
    )(x, graph_blob, param_blob)

    return scores[:n_pos], scores[n_pos:]


# ----------------------------------------------------------------------------
# Pure-JAX reference (for correctness check)
# ----------------------------------------------------------------------------

def sage_forward_ref(pos_edges, neg_edges, blocks, x, layer_params, pred_params):
    h = x
    n_layers = len(layer_params)
    for l, (a_norm, (w_self, w_neigh, bias)) in enumerate(zip(blocks, layer_params)):
        nd = a_norm.shape[0]
        h = h[:nd] @ w_self + (a_norm @ h) @ w_neigh + bias
        if l != n_layers - 1:
            h = jnp.maximum(h, 0.0)
    w1, b1, w2, b2, w3, b3 = pred_params

    def mlp(z):
        z = jnp.maximum(z @ w1 + b1, 0.0)
        z = jnp.maximum(z @ w2 + b2, 0.0)
        return z @ w3 + b3

    return (mlp(h[pos_edges[0]] * h[pos_edges[1]]),
            mlp(h[neg_edges[0]] * h[neg_edges[1]]))


# ----------------------------------------------------------------------------
# Main
# ----------------------------------------------------------------------------

if __name__ == "__main__":
    key = jax.random.PRNGKey(0)

    in_size = 32
    hid_size = 32
    num_layers = 3

    # node counts per hop: block l maps src nodes (N[l]) -> dst nodes (N[l+1])
    node_counts = [40, 32, 24, 16]

    # ----- deterministic parameter init -------------------------------------
    def glorot(k, shape):
        fan_in, fan_out = shape
        lim = np.sqrt(6.0 / (fan_in + fan_out))
        return jax.random.uniform(k, shape, jnp.float32, -lim, lim)

    layer_params = []
    dims = [in_size] + [hid_size] * num_layers
    for l in range(num_layers):
        key, k1, k2 = jax.random.split(key, 3)
        w_self = glorot(k1, (dims[l], dims[l + 1]))   # [in, out] (pre-transposed)
        w_neigh = glorot(k2, (dims[l], dims[l + 1]))
        bias = jnp.zeros((1, dims[l + 1]), jnp.float32)
        layer_params.append((w_self, w_neigh, bias))

    pred_params = []
    pred_dims = [(hid_size, hid_size), (hid_size, hid_size), (hid_size, 1)]
    for (din, dout) in pred_dims:
        key, k1, k2 = jax.random.split(key, 3)
        w = glorot(k1, (din, dout))
        b = jax.random.uniform(k2, (1, dout), jnp.float32, -0.01, 0.01)
        pred_params.extend([w, b])
    pred_params = tuple(pred_params)

    # ----- deterministic synthetic graph blocks ------------------------------
    blocks = []
    for l in range(num_layers):
        n_s, n_d = node_counts[l], node_counts[l + 1]
        key, k = jax.random.split(key)
        adj = (jax.random.uniform(k, (n_d, n_s)) < 0.3).astype(jnp.float32)
        # ensure every dst node sees at least itself (dst nodes are prefix of src)
        adj = adj.at[jnp.arange(n_d), jnp.arange(n_d)].set(1.0)
        deg = jnp.sum(adj, axis=1, keepdims=True)
        a_norm = adj / jnp.maximum(deg, 1.0)          # mean aggregator
        blocks.append(a_norm)

    # ----- positive / negative edge index pairs -------------------------------
    # Ep + En chosen so 2*(Ep+En) is a multiple of 16 (sublane-aligned src/dst split)
    n_final = node_counts[-1]
    n_pos_edges, n_neg_edges = 8, 8
    key, k1, k2, k3, k4 = jax.random.split(key, 5)
    pos_edges = (jax.random.randint(k1, (n_pos_edges,), 0, n_final),
                 jax.random.randint(k2, (n_pos_edges,), 0, n_final))
    neg_edges = (jax.random.randint(k3, (n_neg_edges,), 0, n_final),
                 jax.random.randint(k4, (n_neg_edges,), 0, n_final))

    # ----- input node features -----------------------------------------------
    key, kx = jax.random.split(key)
    x = jax.random.normal(kx, (node_counts[0], in_size), jnp.float32)

    # ----- run ---------------------------------------------------------------
    h_pos, h_neg = sage_forward(pos_edges, neg_edges, blocks, x,
                                layer_params, pred_params)
    jax.block_until_ready((h_pos, h_neg))

    # correctness vs pure-JAX reference
    r_pos, r_neg = sage_forward_ref(pos_edges, neg_edges, blocks, x,
                                    layer_params, pred_params)
    np.testing.assert_allclose(np.asarray(h_pos), np.asarray(r_pos),
                               rtol=1e-5, atol=1e-5)
    np.testing.assert_allclose(np.asarray(h_neg), np.asarray(r_neg),
                               rtol=1e-5, atol=1e-5)

    print("KERNEL_OK")
</pallas_src>

<mosaic_0001>
module attributes {stable_mosaic.version = 11 : i64} {
  func.func @kernel(%arg0: memref<40x32xf32, #tpu.memory_space<vmem>>, %arg1: memref<104x40xf32, #tpu.memory_space<vmem>>, %arg2: memref<336x32xf32, #tpu.memory_space<vmem>>, %arg3: memref<16x1xf32, #tpu.memory_space<vmem>>) attributes {dimension_semantics = [], scalar_prefetch = 0 : i64, scratch_operands = 0 : i64, tpu.core_type = #tpu.core_type<tc>} {
    %c0 = arith.constant 0 : index
    %c0_0 = arith.constant 0 : index
    %0 = vector.load %arg0[%c0, %c0_0] : memref<40x32xf32, #tpu.memory_space<vmem>>, vector<40x32xf32>
    %c0_1 = arith.constant 0 : index
    %c0_2 = arith.constant 0 : index
    %1 = vector.load %arg0[%c0_1, %c0_2] : memref<40x32xf32, #tpu.memory_space<vmem>>, vector<32x32xf32>
    %c0_3 = arith.constant 0 : index
    %c0_4 = arith.constant 0 : index
    %2 = vector.load %arg1[%c0_3, %c0_4] : memref<104x40xf32, #tpu.memory_space<vmem>>, vector<32x40xf32>
    %c0_5 = arith.constant 0 : index
    %c0_6 = arith.constant 0 : index
    %3 = vector.load %arg2[%c0_5, %c0_6] : memref<336x32xf32, #tpu.memory_space<vmem>>, vector<32x32xf32>
    %c32 = arith.constant 32 : index
    %c0_7 = arith.constant 0 : index
    %4 = vector.load %arg2[%c32, %c0_7] : memref<336x32xf32, #tpu.memory_space<vmem>>, vector<32x32xf32>
    %c64 = arith.constant 64 : index
    %c0_8 = arith.constant 0 : index
    %5 = vector.load %arg2[%c64, %c0_8] : memref<336x32xf32, #tpu.memory_space<vmem>>, vector<1x32xf32>
    %cst = arith.constant dense<0.000000e+00> : vector<32x32xf32>
    %6 = tpu.matmul %2, %0, %cst {dimension_numbers = #tpu.dot_dimension_numbers<[1], [0], [0], [1], [0, 0, 1, 1], [], []>} : vector<32x40xf32>, vector<40x32xf32>, vector<32x32xf32> -> vector<32x32xf32>
    %cst_9 = arith.constant dense<0.000000e+00> : vector<32x32xf32>
    %7 = tpu.matmul %1, %3, %cst_9 {dimension_numbers = #tpu.dot_dimension_numbers<[1], [0], [0], [1], [0, 0, 1, 1], [], []>} : vector<32x32xf32>, vector<32x32xf32>, vector<32x32xf32> -> vector<32x32xf32>
    %cst_10 = arith.constant dense<0.000000e+00> : vector<32x32xf32>
    %8 = tpu.matmul %6, %4, %cst_10 {dimension_numbers = #tpu.dot_dimension_numbers<[1], [0], [0], [1], [0, 0, 1, 1], [], []>} : vector<32x32xf32>, vector<32x32xf32>, vector<32x32xf32> -> vector<32x32xf32>
    %9 = arith.addf %7, %8 : vector<32x32xf32>
    %10 = vector.broadcast %5 : vector<1x32xf32> to vector<32x32xf32>
    %11 = arith.addf %9, %10 : vector<32x32xf32>
    %cst_11 = arith.constant 0.000000e+00 : f32
    %12 = vector.broadcast %cst_11 : f32 to vector<32x32xf32>
    %13 = arith.maximumf %11, %12 : vector<32x32xf32>
    %14 = vector.extract_strided_slice %13 {offsets = [0, 0], sizes = [24, 32], strides = [1, 1]} : vector<32x32xf32> to vector<24x32xf32>
    %c32_12 = arith.constant 32 : index
    %c0_13 = arith.constant 0 : index
    %15 = vector.load %arg1[%c32_12, %c0_13] : memref<104x40xf32, #tpu.memory_space<vmem>>, vector<24x32xf32>
    %c72 = arith.constant 72 : index
    %c0_14 = arith.constant 0 : index
    %16 = vector.load %arg2[%c72, %c0_14] : memref<336x32xf32, #tpu.memory_space<vmem>>, vector<32x32xf32>
    %c104 = arith.constant 104 : index
    %c0_15 = arith.constant 0 : index
    %17 = vector.load %arg2[%c104, %c0_15] : memref<336x32xf32, #tpu.memory_space<vmem>>, vector<32x32xf32>
    %c136 = arith.constant 136 : index
    %c0_16 = arith.constant 0 : index
    %18 = vector.load %arg2[%c136, %c0_16] : memref<336x32xf32, #tpu.memory_space<vmem>>, vector<1x32xf32>
    %cst_17 = arith.constant dense<0.000000e+00> : vector<24x32xf32>
    %19 = tpu.matmul %15, %13, %cst_17 {dimension_numbers = #tpu.dot_dimension_numbers<[1], [0], [0], [1], [0, 0, 1, 1], [], []>} : vector<24x32xf32>, vector<32x32xf32>, vector<24x32xf32> -> vector<24x32xf32>
    %cst_18 = arith.constant dense<0.000000e+00> : vector<24x32xf32>
    %20 = tpu.matmul %14, %16, %cst_18 {dimension_numbers = #tpu.dot_dimension_numbers<[1], [0], [0], [1], [0, 0, 1, 1], [], []>} : vector<24x32xf32>, vector<32x32xf32>, vector<24x32xf32> -> vector<24x32xf32>
    %cst_19 = arith.constant dense<0.000000e+00> : vector<24x32xf32>
    %21 = tpu.matmul %19, %17, %cst_19 {dimension_numbers = #tpu.dot_dimension_numbers<[1], [0], [0], [1], [0, 0, 1, 1], [], []>} : vector<24x32xf32>, vector<32x32xf32>, vector<24x32xf32> -> vector<24x32xf32>
    %22 = arith.addf %20, %21 : vector<24x32xf32>
    %23 = vector.broadcast %18 : vector<1x32xf32> to vector<24x32xf32>
    %24 = arith.addf %22, %23 : vector<24x32xf32>
    %cst_20 = arith.constant 0.000000e+00 : f32
    %25 = vector.broadcast %cst_20 : f32 to vector<24x32xf32>
    %26 = arith.maximumf %24, %25 : vector<24x32xf32>
    %27 = vector.extract_strided_slice %26 {offsets = [0, 0], sizes = [16, 32], strides = [1, 1]} : vector<24x32xf32> to vector<16x32xf32>
    %c56 = arith.constant 56 : index
    %c0_21 = arith.constant 0 : index
    %28 = vector.load %arg1[%c56, %c0_21] : memref<104x40xf32, #tpu.memory_space<vmem>>, vector<16x24xf32>
    %c144 = arith.constant 144 : index
    %c0_22 = arith.constant 0 : index
    %29 = vector.load %arg2[%c144, %c0_22] : memref<336x32xf32, #tpu.memory_space<vmem>>, vector<32x32xf32>
    %c176 = arith.constant 176 : index
    %c0_23 = arith.constant 0 : index
    %30 = vector.load %arg2[%c176, %c0_23] : memref<336x32xf32, #tpu.memory_space<vmem>>, vector<32x32xf32>
    %c208 = arith.constant 208 : index
    %c0_24 = arith.constant 0 : index
    %31 = vector.load %arg2[%c208, %c0_24] : memref<336x32xf32, #tpu.memory_space<vmem>>, vector<1x32xf32>
    %cst_25 = arith.constant dense<0.000000e+00> : vector<16x32xf32>
    %32 = tpu.matmul %28, %26, %cst_25 {dimension_numbers = #tpu.dot_dimension_numbers<[1], [0], [0], [1], [0, 0, 1, 1], [], []>} : vector<16x24xf32>, vector<24x32xf32>, vector<16x32xf32> -> vector<16x32xf32>
    %cst_26 = arith.constant dense<0.000000e+00> : vector<16x32xf32>
    %33 = tpu.matmul %27, %29, %cst_26 {dimension_numbers = #tpu.dot_dimension_numbers<[1], [0], [0], [1], [0, 0, 1, 1], [], []>} : vector<16x32xf32>, vector<32x32xf32>, vector<16x32xf32> -> vector<16x32xf32>
    %cst_27 = arith.constant dense<0.000000e+00> : vector<16x32xf32>
    %34 = tpu.matmul %32, %30, %cst_27 {dimension_numbers = #tpu.dot_dimension_numbers<[1], [0], [0], [1], [0, 0, 1, 1], [], []>} : vector<16x32xf32>, vector<32x32xf32>, vector<16x32xf32> -> vector<16x32xf32>
    %35 = arith.addf %33, %34 : vector<16x32xf32>
    %36 = vector.broadcast %31 : vector<1x32xf32> to vector<16x32xf32>
    %37 = arith.addf %35, %36 : vector<16x32xf32>
    %c72_28 = arith.constant 72 : index
    %c0_29 = arith.constant 0 : index
    %38 = vector.load %arg1[%c72_28, %c0_29] : memref<104x40xf32, #tpu.memory_space<vmem>>, vector<32x16xf32>
    %cst_30 = arith.constant dense<0.000000e+00> : vector<32x32xf32>
    %39 = tpu.matmul %38, %37, %cst_30 {dimension_numbers = #tpu.dot_dimension_numbers<[1], [0], [0], [1], [0, 0, 1, 1], [], []>} : vector<32x16xf32>, vector<16x32xf32>, vector<32x32xf32> -> vector<32x32xf32>
    %40 = vector.extract_strided_slice %39 {offsets = [0, 0], sizes = [16, 32], strides = [1, 1]} : vector<32x32xf32> to vector<16x32xf32>
    %41 = vector.extract_strided_slice %39 {offsets = [16, 0], sizes = [16, 32], strides = [1, 1]} : vector<32x32xf32> to vector<16x32xf32>
    %42 = arith.mulf %40, %41 : vector<16x32xf32>
    %c216 = arith.constant 216 : index
    %c0_31 = arith.constant 0 : index
    %43 = vector.load %arg2[%c216, %c0_31] : memref<336x32xf32, #tpu.memory_space<vmem>>, vector<32x32xf32>
    %c248 = arith.constant 248 : index
    %c0_32 = arith.constant 0 : index
    %44 = vector.load %arg2[%c248, %c0_32] : memref<336x32xf32, #tpu.memory_space<vmem>>, vector<1x32xf32>
    %c256 = arith.constant 256 : index
    %c0_33 = arith.constant 0 : index
    %45 = vector.load %arg2[%c256, %c0_33] : memref<336x32xf32, #tpu.memory_space<vmem>>, vector<32x32xf32>
    %c288 = arith.constant 288 : index
    %c0_34 = arith.constant 0 : index
    %46 = vector.load %arg2[%c288, %c0_34] : memref<336x32xf32, #tpu.memory_space<vmem>>, vector<1x32xf32>
    %c296 = arith.constant 296 : index
    %c0_35 = arith.constant 0 : index
    %47 = vector.load %arg2[%c296, %c0_35] : memref<336x32xf32, #tpu.memory_space<vmem>>, vector<32x1xf32>
    %c328 = arith.constant 328 : index
    %c0_36 = arith.constant 0 : index
    %48 = vector.load %arg2[%c328, %c0_36] : memref<336x32xf32, #tpu.memory_space<vmem>>, vector<1x1xf32>
    %cst_37 = arith.constant dense<0.000000e+00> : vector<16x32xf32>
    %49 = tpu.matmul %42, %43, %cst_37 {dimension_numbers = #tpu.dot_dimension_numbers<[1], [0], [0], [1], [0, 0, 1, 1], [], []>} : vector<16x32xf32>, vector<32x32xf32>, vector<16x32xf32> -> vector<16x32xf32>
    %50 = vector.broadcast %44 : vector<1x32xf32> to vector<16x32xf32>
    %51 = arith.addf %49, %50 : vector<16x32xf32>
    %cst_38 = arith.constant 0.000000e+00 : f32
    %52 = vector.broadcast %cst_38 : f32 to vector<16x32xf32>
    %53 = arith.maximumf %51, %52 : vector<16x32xf32>
    %cst_39 = arith.constant dense<0.000000e+00> : vector<16x32xf32>
    %54 = tpu.matmul %53, %45, %cst_39 {dimension_numbers = #tpu.dot_dimension_numbers<[1], [0], [0], [1], [0, 0, 1, 1], [], []>} : vector<16x32xf32>, vector<32x32xf32>, vector<16x32xf32> -> vector<16x32xf32>
    %55 = vector.broadcast %46 : vector<1x32xf32> to vector<16x32xf32>
    %56 = arith.addf %54, %55 : vector<16x32xf32>
    %cst_40 = arith.constant 0.000000e+00 : f32
    %57 = vector.broadcast %cst_40 : f32 to vector<16x32xf32>
    %58 = arith.maximumf %56, %57 : vector<16x32xf32>
    %cst_41 = arith.constant dense<0.000000e+00> : vector<16x1xf32>
    %59 = tpu.matmul %58, %47, %cst_41 {dimension_numbers = #tpu.dot_dimension_numbers<[1], [0], [0], [1], [0, 0, 1, 1], [], []>} : vector<16x32xf32>, vector<32x1xf32>, vector<16x1xf32> -> vector<16x1xf32>
    %60 = vector.broadcast %48 : vector<1x1xf32> to vector<16x1xf32>
    %61 = arith.addf %59, %60 : vector<16x1xf32>
    %c0_42 = arith.constant 0 : index
    %c0_43 = arith.constant 0 : index
    %62 = vector.load %arg3[%c0_42, %c0_43] : memref<16x1xf32, #tpu.memory_space<vmem>>, vector<16x1xf32>
    tpu.vector_store %arg3[%c0_42, %c0_43], %61 {strides = array<i32>} : memref<16x1xf32, #tpu.memory_space<vmem>>, vector<16x1xf32>,
    return
  }
}

</mosaic_0001>

<bundles_post_ra>
// kernel: tpu_custom_call.1
= control target key start
LH: loop header
LB: loop body
LE: loop exit
PB: predicated region body
PF: predicated region fallthrough
CT: control target
= control target key end

     0   :  { %vm32_vm0 = vcmask 326656   ;;  %vm130_vm1 = vcmask 261120   ;;  %v1670_v27 = vmov 0.0|0.0   ;;  %vm1671_vm2 = vmmov 0   ;;  %s1925_s0 = inlined_call_operand.vmem [shape: f32[40,32], index: 0, kind: input, shape index: {}]   ;;  %s1926_s1 = inlined_call_operand.vmem [shape: f32[104,40], index: 1, kind: input, shape index: {}]   ;;  %s1927_s2 = inlined_call_operand.vmem [shape: f32[336,32], index: 2, kind: input, shape index: {}]   ;;  %s1928_s3 = inlined_call_operand.vmem [shape: f32[16,1], index: 3, kind: output, shape index: {}]  }
   0x1   :  { %v14_v0 = vld [vmem:[%s1925_s0] sm:$0xff]  ;;  %v15_v1 = vld [vmem:[%s1925_s0 + $0x8] sm:$0xff]  ;;  %v16_v2 = vld [vmem:[%s1925_s0 + $0x10] sm:$0xff]  ;;  %v1672_v28 = vmov 0.0   ;;  %vm637_vm3 = vcmask 195584   ;;  %vm891_vm4 = vcmask 130048  }
   0x2   :  { %v1571_v3 = vpack.c.bf16 %v15_v1, %v14_v0  ;;  %v17_v4 = vld [vmem:[%s1925_s0 + $0x18] sm:$0xff]  ;;  %v19_v5 = vld [vmem:[%s1926_s1] sm:$0xff]  ;;  %v28_v8 = vld [vmem:[%s1927_s2 + $0x28] sm:$0xff]  ;;  %vm1265_vm5 = vcmask 7168  }
   0x3   :  { %v1575_v6 = vpack.c.bf16 %v17_v4, %v16_v2  ;;  %1412 = vmatprep.mubr.msk.f32.mxu0 %vm32_vm0, %v19_v5  ;;  %v27_v7 = vld [vmem:[%s1927_s2 + $0x20] sm:$0xff]  ;;  %v29_v9 = vld [vmem:[%s1927_s2 + $0x30] sm:$0xff]  ;;  %v30_v11 = vld [vmem:[%s1927_s2 + $0x38] sm:$0xff] }
   0x4   :  { %1572 = vmatprep.subr.bf16.mxu0 %v1571_v3  ;;  %v1579_v10 = vpack.c.bf16 %v28_v8, %v27_v7  ;;  %v1583_v12 = vpack.c.bf16 %v30_v11, %v29_v9  ;;  %v18_v13 = vld [vmem:[%s1925_s0 + $0x20] sm:$0xff]  ;;  %v20_v14 = vld [vmem:[%s1926_s1 + $0x8] sm:$0xff]  ;;  %v21_v15 = vld [vmem:[%s1926_s1 + $0x10] sm:$0xff] }
   0x5   :  { %1574 = vmatpush3.bf16.msra.mxu0 %v1571_v3  ;;  %v22_v16 = vld [vmem:[%s1926_s1 + $0x18] sm:$0xff]  ;;  %v23_v17 = vld [vmem:[%s1927_s2] sm:$0xff]  ;;  %v24_v18 = vld [vmem:[%s1927_s2 + $0x8] sm:$0xff] }
   0x6   :  { %1576 = vmatprep.subr.bf16.mxu0 %v1575_v6  ;;  %1580 = vmatprep.subr.bf16.mxu1 %v1579_v10  ;;  %v1587_v19 = vpack.c.bf16 %v24_v18, %v23_v17  ;;  %v25_v20 = vld [vmem:[%s1927_s2 + $0x10] sm:$0xff]  ;;  %v26_v21 = vld [vmem:[%s1927_s2 + $0x18] sm:$0xff]  ;;  %v344_v29 = vld [vmem:[%s1927_s2 + $0x68] sm:$0xff] }
   0x7   :  { %1582 = vmatpush3.bf16.msra.mxu1 %v1579_v10  ;;  %v1591_v24 = vpack.c.bf16 %v26_v21, %v25_v20  ;;  %v345_v30 = vld [vmem:[%s1927_s2 + $0x70] sm:$0xff]  ;;  %v346_v31 = vld [vmem:[%s1927_s2 + $0x78] sm:$0xff]  ;;  %v347_v33 = vld [vmem:[%s1927_s2 + $0x80] sm:$0xff] }
   0x8   :  { %1584 = vmatprep.subr.bf16.mxu1 %v1583_v12  ;;  %v1602_v32 = vpack.c.bf16 %v345_v30, %v344_v29  ;;  %v1605_v34 = vpack.c.bf16 %v347_v33, %v346_v31  ;;  %v1284_v35 = vld [vmem:[%s1927_s2 + $0x40] ss:$0 sm:$0xff]  ;;  %v340_v49 = vld [vmem:[%s1927_s2 + $0x48] sm:$0xff]  ;;  %v341_v50 = vld [vmem:[%s1927_s2 + $0x50] sm:$0xff] }
   0x9   :  { %1578 = vmatpush3.bf16.msra.mxu0 %v1575_v6  ;;  %v337_v52 = vld [vmem:[%s1926_s1 + $0x20] sm:$0xff]  ;;  %v1608_v53 = vpack.c.bf16 %v341_v50, %v340_v49  ;;  %v342_v54 = vld [vmem:[%s1927_s2 + $0x58] sm:$0xff]  ;;  %v338_v56 = vld [vmem:[%s1926_s1 + $0x28] sm:$0xff] }
   0xa   :  { %1410 = vmatprep.subr.mxu0 %v18_v13  ;;  %v343_v55 = vld [vmem:[%s1927_s2 + $0x60] sm:$0xff]  ;;  %v339_v58 = vld [vmem:[%s1926_s1 + $0x30] sm:$0xff]  ;;  %v626_v7 = vld [vmem:[%s1926_s1 + $0x38] sm:$0xff] }
   0xb   :  { %1586 = vmatpush3.bf16.msra.mxu1 %v1583_v12  ;;  %v1611_v57 = vpack.c.bf16 %v343_v55, %v342_v54  ;;  %v632_v8 = vld [vmem:[%s1927_s2 + $0xb0] sm:$0xff]  ;;  %v633_v9 = vld [vmem:[%s1927_s2 + $0xb8] sm:$0xff]  ;;  %v634_v10 = vld [vmem:[%s1927_s2 + $0xc0] sm:$0xff] }
   0xc   :  { %1588 = vmatprep.subr.bf16.mxu1 %v1587_v19  ;;  %v1617_v11 = vpack.c.bf16 %v633_v9, %v632_v8  ;;  %v635_v12 = vld [vmem:[%s1927_s2 + $0xc8] sm:$0xff]  ;;  %v627_v31 = vld [vmem:[%s1926_s1 + $0x40] sm:$0xff]  ;;  %v629_v33 = vld [vmem:[%s1927_s2 + $0x98] sm:$0xff] }
   0xd   :  { %1411 = vmatpush3.msra.mxu0 %v18_v13  ;;  %v1621_v13 = vpack.c.bf16 %v635_v12, %v634_v10  ;;  %v1294_v17 = vld [vmem:[%s1927_s2 + $0x88] ss:$0 sm:$0xff]  ;;  %v888_v50 = vld [vmem:[%s1926_s1 + $0x50] sm:$0xff] }
   0xe   :  { %1413 = vmatmul.mubr.msk.f32.vlgmr.msra.gmra.mrb[0].mxu0 %vm32_vm0, %v20_v14  ;;  %1595 = vmatprep.subr.bf16.mxu0 %v1670_v27  ;;  %v994_v54 = vld [vmem:[%s1927_s2 + $0xf0] sm:$0xff] }
   0xf   :  { %1415 = vmatprep.mubr.msk.f32.mxu0 %vm32_vm0, %v21_v15 }
  0x12   :  { %1416 = vmatmul.mubr.msk.f32.gmra.mrb[2].mxu0 %vm32_vm0, %v22_v16 }
  0x13   :  { %1454 = vmatprep.mubr.msk.f32.mxu0 %vm1671_vm2, %v1672_v28 }
  0xe1   :  { %v1414_v22 = vpop.f32.mrb[0].mxu0 }
  0xe2   :  { %v111_v23 = vpop.f32.mrb[1].mxu0 }
  0xe3   :  { %1426 = vmatprep.mubr.msk.f32.mxu1 %vm130_vm1, %v111_v23 }
  0xe4   :  { %1427 = vmatmul.mubr.msk.f32.vlgmr.msra.gmra.mrb[0].mxu1 %vm130_vm1, %v1414_v22 }
  0xe5   :  { %v1417_v25 = vpop.f32.mrb[2].mxu0  ;;  %1590 = vmatpush3.bf16.msra.mxu1 %v1587_v19 }
  0xe6   :  { %v121_v26 = vpop.f32.mrb[3].mxu0  ;;  %1592 = vmatprep.subr.bf16.mxu1 %v1591_v24 }
  0xe7   :  { %1429 = vmatprep.mubr.msk.f32.mxu1 %vm130_vm1, %v121_v26 }
  0xe8   :  { %1430 = vmatmul.mubr.msk.f32.gmra.mrb[2].mxu1 %vm130_vm1, %v1417_v25 }
  0xe9   :  { %1594 = vmatpush3.bf16.msra.mxu1 %v1591_v24  ;;  %1440 = vmatprep.mubr.msk.f32.mxu1 %vm130_vm1, %v14_v0 }
  0xea   :  { %1601 = vmatprep.subr.bf16.mxu1 %v1670_v27 }
  0xec   :  { %1441 = vmatmul.mubr.msk.f32.vlgmr.msra.gmra.mrb[0].mxu1 %vm130_vm1, %v15_v1 }
  0xed   :  { %1443 = vmatprep.mubr.msk.f32.mxu1 %vm130_vm1, %v16_v2  ;;  %1603 = vmatpush3.bf16.msra.mxu1 %v1602_v32  ;;  %v628_v32 = vld [vmem:[%s1927_s2 + $0x90] sm:$0xff] }
  0xee   :  { %1604 = vmatprep.subr.bf16.mxu1 %v1670_v27 }
  0xf0   :  { %1444 = vmatmul.mubr.msk.f32.gmra.mrb[2].mxu1 %vm130_vm1, %v17_v4 }
  0xf1   :  { %1471 = vmatprep.mubr.msk.f32.mxu1 %vm1671_vm2, %v1672_v28  ;;  %1606 = vmatpush3.bf16.msra.mxu1 %v1605_v34  ;;  %v1625_v34 = vpack.c.bf16 %v629_v33, %v628_v32 }
 0x1bf   :  { %v1442_v36 = vpop.f32.mrb[0].mxu1 }
 0x1c0   :  { %v330_v37 = vadd.f32 %v1442_v36, %v1284_v35  ;;  %v306_v38 = vpop.f32.mrb[1].mxu1  ;;  %v631_v36 = vld [vmem:[%s1927_s2 + $0xa8] sm:$0xff] }
 0x1c1   :  { %v329_v39 = vadd.f32 %v1284_v35, %v306_v38 }
 0x1c2   :  { %v334_v40 = vmax.f32 %v330_v37, 0.0 }
 0x1c3   :  { %v333_v41 = vmax.f32 %v329_v39, 0.0  ;;  %v1445_v42 = vpop.f32.mrb[2].mxu1 }
 0x1c4   :  { %v332_v43 = vadd.f32 %v1445_v42, %v1284_v35  ;;  %v316_v44 = vpop.f32.mrb[3].mxu1 }
 0x1c5   :  { %v1596_v45 = vpack.c.bf16 %v334_v40, %v333_v41  ;;  %v331_v46 = vadd.f32 %v1284_v35, %v316_v44  ;;  %v630_v35 = vld [vmem:[%s1927_s2 + $0xa0] sm:$0xff] }
 0x1c6   :  { %v336_v47 = vmax.f32 %v332_v43, 0.0  ;;  %v1629_v39 = vpack.c.bf16 %v631_v36, %v630_v35 }
 0x1c7   :  { %v335_v48 = vmax.f32 %v331_v46, 0.0  ;;  %1597 = vmatpush3.bf16.msra.mxu0 %v1596_v45  ;;  %v991_v45 = vld [vmem:[%s1927_s2 + $0xd8] sm:$0xff]  ;;  %v992_v46 = vld [vmem:[%s1927_s2 + $0xe0] sm:$0xff] }
 0x1c8   :  { %1598 = vmatprep.subr.bf16.mxu0 %v1670_v27  ;;  %v1637_v49 = vpack.c.bf16 %v992_v46, %v991_v45 }
 0x1c9   :  { %v1599_v51 = vpack.c.bf16 %v336_v47, %v335_v48 }
 0x1cb   :  { %1600 = vmatpush3.bf16.msra.mxu0 %v1599_v51  ;;  %v889_v51 = vld [vmem:[%s1926_s1 + $0x58] sm:$0xff] }
 0x1cc   :  { %1607 = vmatprep.subr.bf16.mxu0 %v1670_v27 }
 0x1ce   :  { %1455 = vmatmul.mubr.msk.f32.vlgmr.msra.gmra.mrb[4].mxu0 %vm130_vm1, %v337_v52  ;;  %v890_v52 = vld [vmem:[%s1926_s1 + $0x60] sm:$0xff] }
 0x1cf   :  { %1457 = vmatprep.mubr.msk.f32.mxu0 %vm1671_vm2, %v1672_v28  ;;  %1609 = vmatpush3.bf16.msra.mxu0 %v1608_v53  ;;  %v993_v53 = vld [vmem:[%s1927_s2 + $0xe8] sm:$0xff] }
 0x1d0   :  { %1610 = vmatprep.subr.bf16.mxu0 %v1670_v27  ;;  %v1641_v55 = vpack.c.bf16 %v994_v54, %v993_v53 }
 0x1d2   :  { %1458 = vmatmul.mubr.msk.f32.gmra.mrb[6].mxu0 %vm130_vm1, %v338_v56  ;;  %v996_v56 = vld [vmem:[%s1927_s2 + $0x100] sm:$0xff] }
 0x1d3   :  { %1460 = vmatprep.mubr.msk.f32.mxu0 %vm1671_vm2, %v1672_v28  ;;  %1612 = vmatpush3.bf16.msra.mxu0 %v1611_v57  ;;  %v997_v57 = vld [vmem:[%s1927_s2 + $0x108] sm:$0xff] }
 0x1d4   :  { %1618 = vmatprep.subr.bf16.mxu0 %v1617_v11 }
 0x1d6   :  { %1461 = vmatmul.mubr.msk.f32.gmra.mrb[8].mxu0 %vm130_vm1, %v339_v58  ;;  %v1645_v58 = vpack.c.bf16 %v997_v57, %v996_v56 }
 0x1d7   :  { %1488 = vmatprep.mubr.msk.f32.mxu0 %vm1671_vm2, %v1672_v28 }
 0x1da   :  { %1489 = vmatmul.mubr.msk.f32.vlgmr.msra.gmra.mrb[10].mxu0 %vm130_vm1, %v333_v41  ;;  %v1301_v41 = vld [vmem:[%s1927_s2 + $0xd0] ss:$0 sm:$0xff] }
 0x1db   :  { %1491 = vmatprep.mubr.msk.f32.mxu0 %vm1671_vm2, %v1672_v28  ;;  %1620 = vmatpush3.bf16.msra.mxu0 %v1617_v11 }
 0x1dc   :  { %1622 = vmatprep.subr.bf16.mxu0 %v1621_v13 }
 0x1de   :  { %1492 = vmatmul.mubr.msk.f32.gmra.mrb[12].mxu0 %vm130_vm1, %v334_v40  ;;  %v887_v40 = vld [vmem:[%s1926_s1 + $0x48] sm:$0xff] }
 0x1df   :  { %1494 = vmatprep.mubr.msk.f32.mxu0 %vm1671_vm2, %v1672_v28  ;;  %1624 = vmatpush3.bf16.msra.mxu0 %v1621_v13 }
 0x1e0   :  { %1626 = vmatprep.subr.bf16.mxu0 %v1625_v34 }
 0x1e2   :  { %1495 = vmatmul.mubr.msk.f32.gmra.mrb[14].mxu0 %vm130_vm1, %v335_v48 }
 0x2a1   :  { %v424_v59 = vpop.f32.mrb[4].mxu0 }
 0x2a2   :  { %v1456_v60 = vpop.f32.mrb[5].mxu0  ;;  %1472 = vmatmul.mubr.msk.f32.vlgmr.msra.gmra.mrb[4].mxu1 %vm130_vm1, %v424_v59 }
 0x2a3   :  { %1474 = vmatprep.mubr.msk.f32.mxu1 %vm1671_vm2, %v1672_v28 }
 0x2a5   :  { %v429_v61 = vpop.f32.mrb[6].mxu0 }
 0x2a6   :  { %v1459_v62 = vpop.f32.mrb[7].mxu0  ;;  %1475 = vmatmul.mubr.msk.f32.gmra.mrb[6].mxu1 %vm130_vm1, %v429_v61 }
 0x2a7   :  { %1477 = vmatprep.mubr.msk.f32.mxu1 %vm1671_vm2, %v1672_v28 }
 0x2a9   :  { %v434_v63 = vpop.f32.mrb[8].mxu0 }
 0x2aa   :  { %1478 = vmatmul.mubr.msk.f32.gmra.mrb[8].mxu1 %vm130_vm1, %v434_v63  ;;  %v1462_v0 = vpop.f32.mrb[9].mxu0 }
 0x2ab   :  { %1503 = vmatprep.mubr.msk.f32.mxu1 %vm637_vm3, %v626_v7  ;;  %v1306_v7 = vld [vmem:[%s1927_s2 + $0xf8] ss:$0 sm:$0xff] }
 0x2ad   :  { %v602_v1 = vpop.f32.mrb[10].mxu0 }
 0x2ae   :  { %v1490_v2 = vpop.f32.mrb[11].mxu0 }
 0x2af   :  { %v999_v2 = vld [vmem:[%s1927_s2 + $0x118] sm:$0xff] }
 0x2b1   :  { %v607_v3 = vpop.f32.mrb[12].mxu0 }
 0x2b2   :  { %v1493_v4 = vpop.f32.mrb[13].mxu0 }
 0x2b3   :  { %v1001_v4 = vld [vmem:[%s1927_s2 + $0x128] sm:$0xff] }
 0x2b5   :  { %v612_v5 = vpop.f32.mrb[14].mxu0 }
 0x2b6   :  { %v1496_v6 = vpop.f32.mrb[15].mxu0 }
 0x375   :  { %v513_v14 = vpop.f32.mrb[4].mxu1 }
 0x376   :  { %v603_v15 = vadd.f32 %v602_v1, %v513_v14  ;;  %v1473_v16 = vpop.f32.mrb[5].mxu1  ;;  %v998_v1 = vld [vmem:[%s1927_s2 + $0x110] sm:$0xff]  ;;  %v1003_v14 = vld [vmem:[%s1927_s2 + $0x138] sm:$0xff] }
 0x378   :  { %v620_v19 = vadd.f32 %v1294_v17, %v603_v15  ;;  %v1004_v15 = vld [vmem:[%s1927_s2 + $0x140] sm:$0xff] }
 0x379   :  { %v518_v18 = vpop.f32.mrb[6].mxu1  ;;  %v1657_v16 = vpack.c.bf16 %v1004_v15, %v1003_v14 }
 0x37a   :  { %v608_v20 = vadd.f32 %v607_v3, %v518_v18  ;;  %v1476_v21 = vpop.f32.mrb[7].mxu1  ;;  %v623_v24 = vmax.f32 %v620_v19, 0.0  ;;  %v1649_v3 = vpack.c.bf16 %v999_v2, %v998_v1 }
 0x37c   :  { %v621_v22 = vadd.f32 %v1294_v17, %v608_v20 }
 0x37d   :  { %v523_v23 = vpop.f32.mrb[8].mxu1 }
 0x37e   :  { %v624_v25 = vmax.f32 %v621_v22, 0.0  ;;  %v613_v26 = vadd.f32 %v612_v5, %v523_v23  ;;  %v1479_v27 = vpop.f32.mrb[9].mxu1  ;;  %v1002_v5 = vld [vmem:[%s1927_s2 + $0x130] sm:$0xff] }
 0x37f   :  { %v1653_v6 = vpack.c.bf16 %v1002_v5, %v1001_v4 }
 0x380   :  { %v622_v28 = vadd.f32 %v1294_v17, %v613_v26  ;;  %v1613_v29 = vpack.c.bf16 %v624_v25, %v623_v24  ;;  %v1309_v17 = vld [vmem:[%s1927_s2 + $0x120] ss:$0 sm:$0xff] }
 0x382   :  { %v625_v30 = vmax.f32 %v622_v28, 0.0  ;;  %1614 = vmatprep.subr.bf16.mxu1 %v1613_v29 }
 0x383   :  { %1616 = vmatpush3.bf16.msra.mxu1 %v1613_v29 }
 0x384   :  { %1501 = vmatprep.subr.mxu1 %v625_v30 }
 0x387   :  { %1502 = vmatpush3.msra.mxu1 %v625_v30 }
 0x388   :  { %1504 = vmatmul.mubr.msk.f32.vlgmr.msra.gmra.mrb[10].mxu1 %vm637_vm3, %v627_v31 }
 0x389   :  { %1532 = vmatprep.mubr.msk.f32.mxu1 %vm891_vm4, %v887_v40 }
 0x45b   :  { %v1505_v37 = vpop.f32.mrb[10].mxu1 }
 0x45c   :  { %v710_v38 = vpop.f32.mrb[11].mxu1 }
 0x45d   :  { %1514 = vmatprep.mubr.msk.f32.mxu0 %vm130_vm1, %v710_v38 }
 0x45e   :  { %1515 = vmatmul.mubr.msk.f32.vlgmr.msra.gmra.mrb[16].mxu0 %vm130_vm1, %v1505_v37 }
 0x45f   :  { %1628 = vmatpush3.bf16.msra.mxu0 %v1625_v34  ;;  %1525 = vmatprep.mubr.msk.f32.mxu0 %vm130_vm1, %v623_v24  ;;  %v1312_v24 = vld [vmem:[%s1927_s2 + $0x148] ss:$0 sm:$0xff] }
 0x460   :  { %1630 = vmatprep.subr.bf16.mxu0 %v1629_v39 }
 0x463   :  { %1632 = vmatpush3.bf16.msra.mxu0 %v1629_v39 }
 0x464   :  { %1654 = vmatprep.subr.bf16.mxu0 %v1653_v6 }
 0x466   :  { %1526 = vmatmul.mubr.msk.f32.vlgmr.msra.gmra.mrb[16].mxu0 %vm130_vm1, %v624_v25 }
 0x467   :  { %1656 = vmatpush3.bf16.msra.mxu0 %v1653_v6 }
 0x468   :  { %1658 = vmatprep.subr.bf16.mxu0 %v1657_v16 }
 0x46b   :  { %1660 = vmatpush3.bf16.msra.mxu0 %v1657_v16 }
 0x539   :  { %v1527_v42 = vpop.f32.mrb[16].mxu0 }
 0x53a   :  { %v886_v43 = vadd.f32 %v1527_v42, %v1301_v41  ;;  %v872_v44 = vpop.f32.mrb[17].mxu0 }
 0x53b   :  { %v885_v47 = vadd.f32 %v1301_v41, %v872_v44 }
 0x53d   :  { %v1633_v48 = vpack.c.bf16 %v886_v43, %v885_v47 }
 0x53f   :  { %1634 = vmatprep.subr.bf16.mxu1 %v1633_v48 }
 0x540   :  { %1636 = vmatpush3.bf16.msra.mxu1 %v1633_v48 }
 0x541   :  { %1638 = vmatprep.subr.bf16.mxu1 %v1637_v49 }
 0x543   :  { %1533 = vmatmul.mubr.msk.f32.vlgmr.msra.gmra.mrb[12].mxu1 %vm891_vm4, %v888_v50 }
 0x544   :  { %1535 = vmatprep.mubr.msk.f32.mxu1 %vm891_vm4, %v889_v51  ;;  %1640 = vmatpush3.bf16.msra.mxu1 %v1637_v49 }
 0x545   :  { %1642 = vmatprep.subr.bf16.mxu1 %v1641_v55 }
 0x547   :  { %1536 = vmatmul.mubr.msk.f32.gmra.mrb[14].mxu1 %vm891_vm4, %v890_v52 }
 0x548   :  { %1644 = vmatpush3.bf16.msra.mxu1 %v1641_v55 }
 0x549   :  { %1646 = vmatprep.subr.bf16.mxu1 %v1645_v58 }
 0x616   :  { %v1534_v59 = vpop.f32.mrb[12].mxu1 }
 0x617   :  { %v970_v60 = vpop.f32.mrb[13].mxu1 }
 0x61a   :  { %v1537_v61 = vpop.f32.mrb[14].mxu1 }
 0x61b   :  { %v990_v62 = vmul.f32 %v1537_v61, %v1534_v59  ;;  %v980_v63 = vpop.f32.mrb[15].mxu1 }
 0x61c   :  { %v989_v0 = vmul.f32 %v980_v63, %v970_v60 }
 0x61e   :  { %1546 = vmatprep.mubr.msk.f32.mxu1 %vm130_vm1, %v989_v0 }
 0x61f   :  { %1547 = vmatmul.mubr.msk.f32.vlgmr.msra.gmra.mrb[16].mxu1 %vm130_vm1, %v990_v62 }
 0x620   :  { %1648 = vmatpush3.bf16.msra.mxu1 %v1645_v58 }
 0x621   :  { %1650 = vmatprep.subr.bf16.mxu1 %v1649_v3 }
 0x624   :  { %1652 = vmatpush3.bf16.msra.mxu1 %v1649_v3 }
 0x6f2   :  { %v1548_v8 = vpop.f32.mrb[16].mxu1 }
 0x6f3   :  { %v1088_v9 = vadd.f32 %v1548_v8, %v1306_v7  ;;  %v1082_v10 = vpop.f32.mrb[17].mxu1 }
 0x6f4   :  { %v1083_v11 = vadd.f32 %v1306_v7, %v1082_v10 }
 0x6f5   :  { %v1092_v13 = vmax.f32 %v1088_v9, 0.0 }
 0x6f6   :  { %v1091_v12 = vmax.f32 %v1083_v11, 0.0 }
 0x6f8   :  { %1557 = vmatprep.mubr.msk.f32.mxu1 %vm130_vm1, %v1091_v12 }
 0x6f9   :  { %1558 = vmatmul.mubr.msk.f32.vlgmr.msra.gmra.mrb[18].mxu1 %vm130_vm1, %v1092_v13 }
 0x7cc   :  { %v1559_v18 = vpop.f32.mrb[18].mxu1 }
 0x7cd   :  { %v1175_v19 = vadd.f32 %v1559_v18, %v1309_v17  ;;  %v1169_v20 = vpop.f32.mrb[19].mxu1 }
 0x7ce   :  { %v1170_v21 = vadd.f32 %v1309_v17, %v1169_v20 }
 0x7cf   :  { %v1179_v23 = vmax.f32 %v1175_v19, 0.0 }
 0x7d0   :  { %v1178_v22 = vmax.f32 %v1170_v21, 0.0 }
 0x7d2   :  { %1568 = vmatprep.mubr.msk.f32.mxu0 %vm130_vm1, %v1178_v22 }
 0x7d3   :  { %1569 = vmatmul.mubr.msk.f32.vlgmr.msra.gmra.mrb[18].mxu0 %vm130_vm1, %v1179_v23 }
 0x8a6   :  { %v1570_v25 = vpop.f32.mrb[18].mxu0 }
 0x8a7   :  { %v1262_v26 = vadd.f32 %v1570_v25, %v1312_v24  ;;  %v1256_v27 = vpop.f32.mrb[19].mxu0 }
 0x8a8   :  { %v1257_v28 = vadd.f32 %v1312_v24, %v1256_v27 }
 0x8a9   :  { %1267 = vst.msk [vmem:[%s1928_s3 + $0x8] sm:$0xff] %vm1265_vm5, %v1262_v26 }
 0x8aa   :  { %1266 = vst.msk [vmem:[%s1928_s3] sm:$0xff] %vm1265_vm5, %v1257_v28 }

</bundles_post_ra>
